<compile_context>
chip_gen: v5e
topology: v5e:2x2
jax: 0.10.0
libtpu: 0.0.40
codegen_flags: <defaults>
</compile_context>

<pallas_src>
import jax
import jax.numpy as jnp
from jax.experimental import pallas as pl
from jax.experimental.pallas import tpu as pltpu

NUM_BITS = 4
MIN_VAL = -4.0
MAX_VAL = 4.0
LANE = 128
SUBLANE = 8

_MIB = 1024 * 1024
# 1-D (ragged) path: modest block so the worst-case (sublane-padded) VMEM
# footprint of a 1-D layout stays small.  128K elements, multiple of 8*128.
_RAGGED_BLOCK_ELEMS = 128 * 1024


def _uniform_quant_kernel(x_ref, o_ref):
    num_levels = 2 ** NUM_BITS
    step_size = (MAX_VAL - MIN_VAL) / (num_levels - 1)
    inv_step = 1.0 / step_size  # 15/8 = 1.875, exact in f32
    # Clamp in the *input* dtype (double-rate for bf16); since
    # (MAX_VAL - MIN_VAL) / step == num_levels - 1, the post-round clip of the
    # reference is then redundant and dropped.
    x = jnp.clip(x_ref[...], MIN_VAL, MAX_VAL).astype(jnp.float32)
    # Round in f32: jnp.round is round-half-to-even, matching torch.round.
    x_q = jnp.round((x - MIN_VAL) * inv_step)
    o_ref[...] = (x_q * step_size + MIN_VAL).astype(o_ref.dtype)


def _round_up(v, m):
    return ((v + m - 1) // m) * m


_HW_CONFIG = None


def _hw_config():
    """Generation-aware (target_block_bytes, vmem_limit_bytes, min_grid_blocks)."""
    global _HW_CONFIG
    if _HW_CONFIG is not None:
        return _HW_CONFIG

    big_vmem_single_tc = False
    try:
        kind = jax.devices()[0].device_kind.lower()
        # v5e / v6e: 128 MiB VMEM, one TensorCore per chip.
        big_vmem_single_tc = any(
            tok in kind for tok in ("v5 lite", "v5e", "v5lite", "v6 lite", "v6e", "v6lite")
        )
    except Exception:
        pass

    if big_vmem_single_tc:
        target_block_bytes = 16 * _MIB   # 4 buffers live ~= 64 MiB
        vmem_limit_bytes = 96 * _MIB     # well under 128 MiB physical
        min_grid_blocks = 2              # single TC: 2 steps suffice to overlap DMA
    else:
        # v7x (64 MiB VMEM per TC, 2 TCs) or unknown: conservative but larger
        # than before so per-step overhead is ~5% instead of ~10-14% at 3.2 TB/s.
        target_block_bytes = 8 * _MIB    # 4 buffers live ~= 32 MiB
        vmem_limit_bytes = 48 * _MIB
        min_grid_blocks = 4              # keep both v7x TensorCores busy

    # Safety cap from the runtime-reported VMEM capacity, when available.
    try:
        phys = int(getattr(pltpu.get_tpu_info(), "vmem_capacity_bytes", 0))
        if phys > 0:
            vmem_limit_bytes = min(vmem_limit_bytes, max(phys - 8 * _MIB, 16 * _MIB))
    except Exception:
        pass

    _HW_CONFIG = (target_block_bytes, vmem_limit_bytes, min_grid_blocks)
    return _HW_CONFIG


def _choose_block_rows(rows, itemsize, target_block_bytes, min_grid_blocks):
    # Packed sublane multiple: 8 for 4-byte, 16 for 2-byte, 32 for 1-byte dtypes.
    sub = max(SUBLANE, 32 // max(itemsize, 1))
    # Rows giving ~target_block_bytes per block direction.
    by_bytes = max(sub, (target_block_bytes // (LANE * itemsize)) // sub * sub)
    # Don't collapse the grid below min_grid_blocks steps for large tensors.
    by_grid = max(sub, _round_up(pl.cdiv(rows, min_grid_blocks), sub))
    return min(by_bytes, by_grid, _round_up(rows, sub))


def _quantize_2d(x2d, cfg):
    target_block_bytes, vmem_limit_bytes, min_grid_blocks = cfg
    rows, lanes = x2d.shape
    block_rows = _choose_block_rows(
        rows, x2d.dtype.itemsize, target_block_bytes, min_grid_blocks
    )
    grid = (pl.cdiv(rows, block_rows),)
    return pl.pallas_call(
        _uniform_quant_kernel,
        out_shape=jax.ShapeDtypeStruct((rows, lanes), x2d.dtype),
        grid_spec=pltpu.PrefetchScalarGridSpec(
            num_scalar_prefetch=0,
            grid=grid,
            in_specs=[pl.BlockSpec((block_rows, lanes), lambda i: (i, 0))],
            out_specs=pl.BlockSpec((block_rows, lanes), lambda i: (i, 0)),
        ),
        compiler_params=pltpu.CompilerParams(
            dimension_semantics=("parallel",),
            vmem_limit_bytes=vmem_limit_bytes,
        ),
    )(x2d)


def _quantize_1d(x1d, cfg):
    """Ragged path (total not a multiple of 128): flat 1-D blocks, masked tail."""
    _, vmem_limit_bytes, _ = cfg
    n = x1d.shape[0]
    # Block length: multiple of 128 lanes, capped so tiny inputs get one block.
    block_len = min(_RAGGED_BLOCK_ELEMS, _round_up(n, LANE))
    block_len = max(LANE, _round_up(block_len, LANE))
    grid = (pl.cdiv(n, block_len),)
    return pl.pallas_call(
        _uniform_quant_kernel,
        out_shape=jax.ShapeDtypeStruct((n,), x1d.dtype),
        grid_spec=pltpu.PrefetchScalarGridSpec(
            num_scalar_prefetch=0,
            grid=grid,
            in_specs=[pl.BlockSpec((block_len,), lambda i: (i,))],
            out_specs=pl.BlockSpec((block_len,), lambda i: (i,)),
        ),
        compiler_params=pltpu.CompilerParams(
            dimension_semantics=("parallel",),
            vmem_limit_bytes=vmem_limit_bytes,
        ),
    )(x1d)


def uniform_quantizer_forward(x):
    """Elementwise uniform quantize/dequantize (UniformQuantizer.forward)."""
    orig_shape = x.shape
    n = x.size
    if n == 0:
        return x
    cfg = _hw_config()
    if n % LANE == 0:
        # Fast path: lane-aligned reshape, no extra HBM passes.
        x2d = jnp.reshape(x, (n // LANE, LANE))
        return _quantize_2d(x2d, cfg).reshape(orig_shape)
    # Ragged total: flat 1-D kernel; Pallas masks the tail (no pad / slice).
    return _quantize_1d(jnp.ravel(x), cfg).reshape(orig_shape)


def _reference_forward(x):
    # Same arithmetic factorization as the kernel (mathematically identical to
    # the PyTorch module; multiply by the exact 1/step instead of dividing).
    num_levels = 2 ** NUM_BITS
    step_size = (MAX_VAL - MIN_VAL) / (num_levels - 1)
    inv_step = 1.0 / step_size
    x_normalized = (x.astype(jnp.float32) - MIN_VAL) * inv_step
    x_quantized = jnp.clip(jnp.round(x_normalized), 0, num_levels - 1)
    return (x_quantized * step_size + MIN_VAL).astype(x.dtype)


# TODO(synk): calculate_compression_ratio / last_compression_stats are referenced
# by the PyTorch module but not defined in quantizer.py; they do not affect the
# returned tensor, so only the dequantized output is produced here.

if __name__ == "__main__":
    key = jax.random.PRNGKey(0)

    # NCHW latent tensor, matching the PyTorch module's usage.
    x = jax.random.normal(key, (2, 4, 16, 16), dtype=jnp.float32) * 3.0
    y = jax.block_until_ready(uniform_quantizer_forward(x))
    y_ref = _reference_forward(x)
    assert y.shape == x.shape and y.dtype == x.dtype
    assert jnp.allclose(y, y_ref, atol=1e-6), "f32 mismatch vs reference"

    # bf16 input: I/O stays bf16 (half the HBM bytes), math in f32.
    xb = (jax.random.normal(jax.random.PRNGKey(1), (4, 8, 8, 8)) * 3.0).astype(
        jnp.bfloat16
    )
    yb = jax.block_until_ready(uniform_quantizer_forward(xb))
    assert yb.dtype == jnp.bfloat16
    assert jnp.allclose(
        yb.astype(jnp.float32), _reference_forward(xb).astype(jnp.float32),
        atol=1e-2,
    ), "bf16 mismatch vs reference"

    # Odd total size -> exercises the flat 1-D masked-tail path (no pad/slice).
    xo = jax.random.normal(jax.random.PRNGKey(2), (3, 5, 7), dtype=jnp.float32) * 3.0
    yo = jax.block_until_ready(uniform_quantizer_forward(xo))
    assert yo.shape == xo.shape
    assert jnp.allclose(yo, _reference_forward(xo), atol=1e-6), "odd-size mismatch"

    # Larger odd total -> multi-block ragged 1-D path.
    xo2 = jax.random.normal(jax.random.PRNGKey(3), (7, 300), dtype=jnp.float32) * 3.0
    yo2 = jax.block_until_ready(uniform_quantizer_forward(xo2))
    assert yo2.shape == xo2.shape
    assert jnp.allclose(yo2, _reference_forward(xo2), atol=1e-6), "ragged mismatch"

    print("KERNEL_OK")
</pallas_src>

<mosaic_0001>
module attributes {stable_mosaic.version = 11 : i64} {
  func.func @_uniform_quant_kernel(%arg0: i32, %arg1: memref<8x128xf32, #tpu.memory_space<vmem>>, %arg2: memref<8x128xf32, #tpu.memory_space<vmem>>) attributes {dimension_semantics = [#tpu.dimension_semantics<parallel>], iteration_bounds = array<i64: 2>, scalar_prefetch = 0 : i64, scratch_operands = 0 : i64, tpu.core_type = #tpu.core_type<tc>, window_params = [{transform_indices = @transform_0, window_bounds = array<i64: 8, 128>}, {transform_indices = @transform_1, window_bounds = array<i64: 8, 128>}]} {
    %c0 = arith.constant 0 : index
    %c0_0 = arith.constant 0 : index
    %0 = vector.load %arg1[%c0, %c0_0] : memref<8x128xf32, #tpu.memory_space<vmem>>, vector<8x128xf32>
    %cst = arith.constant -4.000000e+00 : f32
    %cst_1 = arith.constant 4.000000e+00 : f32
    %1 = vector.broadcast %cst : f32 to vector<8x128xf32>
    %2 = arith.maximumf %1, %0 : vector<8x128xf32>
    %3 = vector.broadcast %cst_1 : f32 to vector<8x128xf32>
    %4 = arith.minimumf %3, %2 : vector<8x128xf32>
    %cst_2 = arith.constant -4.000000e+00 : f32
    %5 = vector.broadcast %cst_2 : f32 to vector<8x128xf32>
    %6 = arith.subf %4, %5 : vector<8x128xf32>
    %cst_3 = arith.constant 1.875000e+00 : f32
    %7 = vector.broadcast %cst_3 : f32 to vector<8x128xf32>
    %8 = arith.mulf %6, %7 : vector<8x128xf32>
    %9 = math.roundeven %8 : vector<8x128xf32>
    %cst_4 = arith.constant 0.533333361 : f32
    %10 = vector.broadcast %cst_4 : f32 to vector<8x128xf32>
    %11 = arith.mulf %9, %10 : vector<8x128xf32>
    %cst_5 = arith.constant -4.000000e+00 : f32
    %12 = vector.broadcast %cst_5 : f32 to vector<8x128xf32>
    %13 = arith.addf %11, %12 : vector<8x128xf32>
    %c0_6 = arith.constant 0 : index
    %c0_7 = arith.constant 0 : index
    %14 = vector.load %arg2[%c0_6, %c0_7] : memref<8x128xf32, #tpu.memory_space<vmem>>, vector<8x128xf32>
    tpu.vector_store %arg2[%c0_6, %c0_7], %13 {strides = array<i32>} : memref<8x128xf32, #tpu.memory_space<vmem>>, vector<8x128xf32>,
    return
  }
  func.func @transform_0(%arg0: i32) -> (i32, i32) {
    %c0_i32 = arith.constant 0 : i32
    %c0_i32_0 = arith.constant 0 : i32
    return %arg0, %c0_i32 : i32, i32
  }
  func.func @transform_1(%arg0: i32) -> (i32, i32) {
    %c0_i32 = arith.constant 0 : i32
    %c0_i32_0 = arith.constant 0 : i32
    return %arg0, %c0_i32 : i32, i32
  }
}

</mosaic_0001>

<bundles_post_ra>
// kernel: tpu_custom_call.1
= control target key start
LH: loop header
LB: loop body
LE: loop exit
PB: predicated region body
PF: predicated region fallthrough
CT: control target
= control target key end

     0   :  { %6 = vsyncpa [#allocation3], 0  ;;  %s532_s0 = inlined_call_operand.hbm [shape: f32[16,128], index: 0, kind: input, shape index: {}]   ;;  %s533_s1 = inlined_call_operand.hbm [shape: f32[16,128], index: 1, kind: output, shape index: {}]  }
   0x1   :  { %8 = vsyncpa [#allocation3 + $0x1], 0 }
   0x2   :  { %9 = vsyncpa [#allocation4], 0 }
   0x3   :  { %11 = vsyncpa [#allocation4 + $0x1], 0  ;;  %s405_s6 = smov 0   ;;  %s407_s7 = smov 0  }
   0x4   :  { %s409_s8 = smov 0   ;;  %s411_s9 = smov 0  }
   0x5 LB: > { %s426_s10 = sadd.s32 4294967295, %s393_s9   ;;  %s229_s11 = sadd.s32 4294967294, %s393_s9   ;;  %s393_s9 = sphi %s411_s9, %s543_s9   ;;  %s389_s8 = sphi %s409_s8, %s542_s8   ;;  %s385_s7 = sphi %s407_s7, %s541_s7   ;;  %s381_s6 = sphi %s405_s6, %s540_s6  }
   0x6   : > { %s430_s12 = sadd.s32 1, %s393_s9   ;;  %s24_s13 = sadd.s32 1, %s389_s8 }
   0x7   : > { %s21_s14 = ssub.s32 %s393_s9, %s430_s12  ;;  %p31_p0 = scmp.ne.s32.totalorder %s389_s8, %s385_s7 }
   0x8   : > { %p22_p1 = scmp.eq.s32.totalorder %s21_s14, 0  ;;  %p32_p2 = scmp.eq.s32.totalorder %s393_s9, 0 }
   0x9   : > { %p37_p3 = scmp.ne.s32.totalorder %s385_s7, %s381_s6  ;;  %p38_p4 = scmp.eq.s32.totalorder %s426_s10, 0 }
   0xa   : > { %s442_s15 = scalar_select %p22_p1, %s389_s8, %s24_s13  }
   0xb   : > { %p444_p5 = por %p32_p2, %p31_p0  ;;  %p448_p6 = por %p38_p4, %p37_p3 }
   0xc   : > { %p61_p7 = scmp.eq.s32.totalorder %s426_s10, 1  ;;  %p67_p8 = scmp.eq.s32.totalorder %s229_s11, 1 }
   0xd   : > { %p263_p10 = scmp.lt.s32.totalorder %s393_s9, 2  ;;  %s87_s20 = sand.u32 1, %s389_s8  }
   0xe   : > { %p455_p11 = por %p61_p7, %p31_p0  ;;  %p459_p12 = por %p67_p8, %p37_p3 }
   0xf   : > { %s233_s21 = sshll.u32 %s393_s9, 3  ;;  %s232_s22 = sshll.u32 %s87_s20, 3 }
  0x10   : > { %s95_s25 = scalar_lea.hbm %s532_s0, %s233_s21  ;;  %s91_s27 = scalar_lea.vmem [#allocation2], %s232_s22 }
  0x11   : > { %s97_s26 = sshll.u32 %s95_s25, 4  ;;  %s99_s28 = sshll.u32 %s91_s27, 4  ;;  %s98_s26 = int_to_ptr.hbm [resolvable:$true] %s97_s26  ;;  %s100_s28 = int_to_ptr.vmem [resolvable:$true] %s99_s28 }
  0x12   : > { %p470_p13 = pnand %p263_p10, %p444_p5  ;;  %p234_p0 = scmp.ge.s32.totalorder %s393_s9, 1 }
  0x13   : > { %p104_p1 = scmp.lt.s32.totalorder %s393_s9, 3  ;;  %s88_s30 = scalar_lea.sflag [#allocation3], %s87_s20 }
  0x14   : > { %s297_s2 = sshra.s32 %s98_s26, 4  ;;  %p301_p3 = pneg %p470_p13  ;;  %s298_s2 = int_to_ptr.hbm [resolvable:$true] %s297_s2 }
  0x15   : > { %s299_s3 = scalar_lea.hbm %s298_s2, 8  ;;  %s304_s11 = scalar_lea.hbm %s532_s0, 16 }
  0x16   : > { %p300_p2 = scmp.ne.s32.totalorder %s298_s2, %s299_s3  ;;  %p305_p5 = scmp.lt.s32.totalorder %s298_s2, %s532_s0 }
  0x17   : > { %p306_p8 = scmp.lt.s32.totalorder %s304_s11, %s299_s3 }
  0x18   : > { %p302_p4 = pnand %p301_p3, %p300_p2 }
  0x19   : > { %p307_p10 = por %p306_p8, %p305_p5 }
  0x1a   : > { %p303_p7 = pneg %p302_p4 }
  0x1c   : > { %p308_p9 = pnand %p307_p10, %p303_p7 }
  0x1e   : > { %311 = shalt.err (!%p308_p9)
}
  0x1f   : > { %258 = dma.hbm_to_vmem [thread:$0]  (!%p470_p13), %s98_s26, 128, %s100_s28, %s88_s30  }
  0x20   : > { %p105_p2 = pnand %p234_p0, %p104_p1 }
  0x21   : > { %s491_s16 = sand.u32 (!%p105_p2), 1, %s385_s7  }
  0x22   : > { %108 = sbr.rel (%p105_p2) target bundleno = 63 (0x3f), region = 24  ;;  %s235_s20 = sshll.u32 (!%p105_p2), %s491_s16, 3 }
  0x23   : > { %s111_s21 = scalar_lea.sflag (!%p105_p2), [#allocation3], %s491_s16  ;;  %s114_s22 = scalar_lea.vmem (!%p105_p2), [#allocation2], %s235_s20 }
  0x27   : > { %372 = dma.done.wait (%p448_p6), %s111_s21, 128  }
  0x28   : > { %374 = vsyncadd (%p448_p6), %s111_s21, 4294967168  ;;  %v134_v0 = vld [vmem:[%s114_s22] sm:$0xff]  ;;  %s240_s23 = sshll.u32 %s426_s10, 3  ;;  %s133_s17 = scalar_lea.vmem [#allocation5], %s235_s20 }
  0x29   : > { %v237_v1 = vclamps-f32 %v134_v0, 4.0  ;;  %s154_s26 = scalar_lea.hbm %s533_s1, %s240_s23  ;;  %s156_s27 = sshll.u32 %s133_s17, 4  ;;  %s157_s27 = int_to_ptr.vmem [resolvable:$true] %s156_s27 }
  0x2a   : > { %s158_s28 = sshll.u32 %s154_s26, 4  ;;  %s144_s29 = scalar_lea.sflag [#allocation4], %s491_s16  ;;  %s159_s28 = int_to_ptr.hbm [resolvable:$true] %s158_s28 }
  0x2b   : > { %v238_v2 = vadd.f32 4.0, %v237_v1  ;;  %s341_s30 = sshra.s32 %s159_s28, 4  ;;  %s347_s4 = scalar_lea.hbm %s533_s1, 16  ;;  %s342_s30 = int_to_ptr.hbm [resolvable:$true] %s341_s30 }
  0x2c   : > { %s343_s10 = scalar_lea.hbm %s342_s30, 8  ;;  %p348_p0 = scmp.lt.s32.totalorder %s342_s30, %s533_s1 }
  0x2d   : > { %v138_v3 = vmul.f32 1.875, %v238_v2  ;;  %p344_p6 = scmp.ne.s32.totalorder %s342_s30, %s343_s10  ;;  %p349_p1 = scmp.lt.s32.totalorder %s347_s4, %s343_s10 }
  0x2f   : > { %v245_v4 = vcvt.f32.s32 %v138_v3  ;;  %v243_v5 = vand.u32 2147483647, %v138_v3  ;;  %v248_v7 = vand.u32 2147483648, %v138_v3  ;;  %p345_p9 = pnand %p344_p6, %p455_p11  ;;  %p350_p3 = por %p349_p1, %p348_p0 }
  0x31   : > { %v246_v6 = vcvt.s32.f32 %v245_v4  ;;  %vm244_vm0 = vcmp.lt.f32.partialorder %v243_v5, 8388608.0  ;;  %p346_p13 = pneg %p345_p9 }
  0x33   : > { %v247_v8 = vand.u32 2147483647, %v246_v6  ;;  %p351_p4 = pnand %p350_p3, %p346_p13 }
  0x35   : > { %v249_v9 = vor.u32 %v248_v7, %v247_v8 }
  0x37   : > { %v250_v10 = vsel %vm244_vm0, %v249_v9, %v138_v3 }
  0x38   : > { %v140_v11 = vmul.f32 0.53333336, %v250_v10 }
  0x3a   : > { %v141_v12 = vadd.f32 -4.0, %v140_v11 }
  0x3c   : > { %142 = vst [vmem:[%s133_s17] sm:$0xff] %v141_v12 }
  0x3d   : > { %354 = shalt.err (!%p351_p4)
}
  0x3e   : > { %253 = dma.vmem_to_hbm [thread:$0]  (%p455_p11), %s157_s27, 128, %s159_s28, %s144_s29  }
  0x3f PF: > { %s170_s13 = sand.u32 1, %s381_s6   ;;  %p539_p7 = scmp.ge.s32.totalorder %s393_s9, 2 }
  0x40   : > { %s171_s14 = scalar_lea.sflag [#allocation4], %s170_s13 }
  0x41   : > { %p260_p5 = pnand %p539_p7, %p459_p12 }
  0x43   : > { %p261_p8 = pneg %p260_p5 }
  0x45   : > { %376 = dma.done.wait (%p261_p8), %s171_s14, 128  }
  0x46   : > { %378 = vsyncadd (%p261_p8), %s171_s14, 4294967168  ;;  %p14_p10 = scmp.ge.s32.totalorder %s430_s12, 4   ;;  %s540_s6 = smov %s385_s7 }
  0x47   : > { %s541_s7 = smov %s389_s8  ;;  %s542_s8 = smov %s442_s15 }
  0x48   : > { %s543_s9 = smov %s430_s12  ;;  %16 = sbr.rel (!%p14_p10) target bundleno = 5 (0x5), region = 69 }
  0x4d   :  { %177 = vsyncpa [#allocation3], 1 }
  0x4e   :  { %179 = vsyncpa [#allocation3 + $0x1], 1 }
  0x4f   :  { %180 = vsyncpa [#allocation4], 1 }
  0x50   :  { %182 = vsyncpa [#allocation4 + $0x1], 1 }

</bundles_post_ra>
